<compile_context>
chip_gen: v7x
topology: tpu7x:2x2x1
jax: 0.10.0
libtpu: 0.0.40
codegen_flags: <defaults>
</compile_context>

<pallas_src>
import functools
import inspect

import jax
import jax.numpy as jnp
from jax.experimental import pallas as pl
from jax.experimental.pallas import tpu as pltpu

_LANE = 128      # last dim of every block padded to a multiple of this
_SUBLANE = 16    # bf16 sublane packing: token tile rounded to a multiple of this


def _round_up(x, n):
    return (x + n - 1) // n * n


def _mlp_kernel(x_ref, w1_ref, b1_ref, w2_ref, b2_ref, o_ref):
    """One token tile: (tm, in)@bf16 -> +b1 -> GELU (f32) -> (tm, hid)@bf16 -> +b2."""
    x = x_ref[...]                                                  # bf16 (tm, in_p)
    h = jnp.dot(x, w1_ref[...], preferred_element_type=jnp.float32)
    h = h + b1_ref[...]                                             # f32 epilogue
    # TODO(synk): torch.nn.GELU() defaults to the exact erf form; the tanh
    # approximation is used here (EUP-friendly, ~1e-3 relative difference).
    h = jax.nn.gelu(h, approximate=True)
    # Dropout with p = 0.0 is the identity -> omitted.
    o = jnp.dot(h.astype(w2_ref.dtype), w2_ref[...],
                preferred_element_type=jnp.float32)
    o = o + b2_ref[...]
    o_ref[...] = o.astype(o_ref.dtype)


_HAS_PIPELINE_MODE = (
    hasattr(pl, "Buffered")
    and "pipeline_mode" in inspect.signature(pl.BlockSpec).parameters
)


def _resident_spec(block_shape, single_buffer):
    """BlockSpec for a grid-invariant (resident) operand."""
    if single_buffer and _HAS_PIPELINE_MODE:
        # Constant index_map -> nothing new to prefetch per step; don't waste
        # VMEM double-buffering the weights.
        return pl.BlockSpec(block_shape, lambda i: (0, 0),
                            pipeline_mode=pl.Buffered(1))
    return pl.BlockSpec(block_shape, lambda i: (0, 0))


@functools.partial(jax.jit, static_argnames=("tile_m", "single_buffer_weights"))
def _mlp_forward_impl(x, w1, b1, w2, b2, *, tile_m, single_buffer_weights):
    """x: (N, S, in_features) -> (N, S, out_features)."""
    n, s, in_f = x.shape
    hid_f = w1.shape[1]
    out_f = w2.shape[1]
    m = n * s

    # Lane-pad feature dims to 128 (dense stores / full-width MXU); sublane-pad
    # the token dim so the grid tiles evenly (no divisibility requirement on M).
    in_p = _round_up(in_f, _LANE)
    hid_p = _round_up(hid_f, _LANE)
    out_p = _round_up(out_f, _LANE)
    tm = _round_up(min(tile_m, m), _SUBLANE)
    m_p = _round_up(m, tm)

    cdt = jnp.bfloat16  # MXU compute dtype; accumulation stays f32.

    x2d = jnp.pad(x.reshape(m, in_f), ((0, m_p - m), (0, in_p - in_f))).astype(cdt)
    w1p = jnp.pad(w1, ((0, in_p - in_f), (0, hid_p - hid_f))).astype(cdt)
    w2p = jnp.pad(w2, ((0, hid_p - hid_f), (0, out_p - out_f))).astype(cdt)
    b1p = jnp.pad(b1, (0, hid_p - hid_f)).astype(jnp.float32).reshape(1, hid_p)
    b2p = jnp.pad(b2, (0, out_p - out_f)).astype(jnp.float32).reshape(1, out_p)

    grid = (m_p // tm,)

    # Advisory cost for XLA's scheduler.
    flops = 2 * m_p * (in_p * hid_p + hid_p * out_p)
    bytes_accessed = (x2d.size * 2 + w1p.size * 2 + w2p.size * 2
                      + b1p.size * 4 + b2p.size * 4 + m_p * out_p * x.dtype.itemsize)
    cost = pl.CostEstimate(flops=flops, transcendentals=m_p * hid_p,
                           bytes_accessed=bytes_accessed)

    # VMEM budget: double-buffered x/out tiles + resident weights (+biases) +
    # the f32 intermediate h.  1.5x margin, clamped so the limit stays sane on
    # v7x (64 MiB/TC) while unlocking large resident weights on v5e/v6e.
    wbuf = 1 if (single_buffer_weights and _HAS_PIPELINE_MODE) else 2
    vmem_est = (2 * tm * in_p * 2                             # x tiles (bf16, x2)
                + 2 * tm * out_p * x.dtype.itemsize           # out tiles (x2)
                + wbuf * (in_p * hid_p + hid_p * out_p) * 2   # weights, bf16
                + wbuf * (hid_p + out_p) * 4                  # biases, f32
                + tm * hid_p * 4)                             # f32 intermediate h
    vmem_limit = min(max(32 * 1024 * 1024, int(1.5 * vmem_est)), 100 * 1024 * 1024)

    out2d = pl.pallas_call(
        _mlp_kernel,
        out_shape=jax.ShapeDtypeStruct((m_p, out_p), x.dtype),
        grid_spec=pltpu.PrefetchScalarGridSpec(
            num_scalar_prefetch=0,
            grid=grid,
            in_specs=[
                pl.BlockSpec((tm, in_p), lambda i: (i, 0)),             # x (pipelined)
                _resident_spec((in_p, hid_p), single_buffer_weights),   # w1
                _resident_spec((1, hid_p), single_buffer_weights),      # b1
                _resident_spec((hid_p, out_p), single_buffer_weights),  # w2
                _resident_spec((1, out_p), single_buffer_weights),      # b2
            ],
            out_specs=pl.BlockSpec((tm, out_p), lambda i: (i, 0)),
        ),
        compiler_params=pltpu.CompilerParams(
            dimension_semantics=("parallel",),
            vmem_limit_bytes=vmem_limit),
        cost_estimate=cost,
    )(x2d, w1p, b1p, w2p, b2p)

    return out2d[:m, :out_f].reshape(n, s, out_f)


def mlp_forward(x, w1, b1, w2, b2, *, tile_m=256):
    """Robust wrapper: try single-buffered resident weights, fall back if the
    installed JAX rejects pipeline_mode=pl.Buffered(1)."""
    if _HAS_PIPELINE_MODE:
        try:
            return _mlp_forward_impl(x, w1, b1, w2, b2, tile_m=tile_m,
                                     single_buffer_weights=True)
        except Exception:
            pass
    return _mlp_forward_impl(x, w1, b1, w2, b2, tile_m=tile_m,
                             single_buffer_weights=False)


def init_params(key, in_features, hidden_features, out_features):
    """Deterministic nn.Linear-style init (uniform +-1/sqrt(fan_in))."""
    k1, k2, k3, k4 = jax.random.split(key, 4)
    lim1 = 1.0 / jnp.sqrt(in_features)
    lim2 = 1.0 / jnp.sqrt(hidden_features)
    w1 = jax.random.uniform(k1, (in_features, hidden_features), jnp.float32,
                            -lim1, lim1)
    b1 = jax.random.uniform(k2, (hidden_features,), jnp.float32, -lim1, lim1)
    w2 = jax.random.uniform(k3, (hidden_features, out_features), jnp.float32,
                            -lim2, lim2)
    b2 = jax.random.uniform(k4, (out_features,), jnp.float32, -lim2, lim2)
    return w1, b1, w2, b2


if __name__ == "__main__":
    # Small shapes consistent with the module: (n_samples, n_patches + 1, in_features)
    n_samples, seq_len = 2, 16          # n_patches + 1 = 16
    in_features, hidden_features, out_features = 32, 64, 32

    key = jax.random.PRNGKey(0)
    kx, kp = jax.random.split(key)
    x = jax.random.normal(kx, (n_samples, seq_len, in_features), jnp.float32)
    w1, b1, w2, b2 = init_params(kp, in_features, hidden_features, out_features)

    out = jax.block_until_ready(mlp_forward(x, w1, b1, w2, b2))

    # Pure-JAX reference mirroring the kernel's bf16-matmul / f32-accumulate math.
    xb = x.astype(jnp.bfloat16)
    h_ref = jnp.einsum("nsi,ih->nsh", xb, w1.astype(jnp.bfloat16),
                       preferred_element_type=jnp.float32) + b1
    h_ref = jax.nn.gelu(h_ref, approximate=True)
    ref = jnp.einsum("nsh,ho->nso", h_ref.astype(jnp.bfloat16),
                     w2.astype(jnp.bfloat16),
                     preferred_element_type=jnp.float32) + b2
    ref = ref.astype(x.dtype)

    assert out.shape == (n_samples, seq_len, out_features)
    assert jnp.allclose(out, ref, atol=5e-3, rtol=5e-3)
    print("KERNEL_OK")
</pallas_src>

<mosaic_0001>
module attributes {stable_mosaic.version = 11 : i64} {
  func.func @_mlp_kernel(%arg0: i32, %arg1: memref<32x128xbf16, #tpu.memory_space<vmem>>, %arg2: memref<128x128xbf16, #tpu.memory_space<vmem>>, %arg3: memref<1x128xf32, #tpu.memory_space<vmem>>, %arg4: memref<128x128xbf16, #tpu.memory_space<vmem>>, %arg5: memref<1x128xf32, #tpu.memory_space<vmem>>, %arg6: memref<32x128xf32, #tpu.memory_space<vmem>>) attributes {dimension_semantics = [#tpu.dimension_semantics<parallel>], iteration_bounds = array<i64: 1>, scalar_prefetch = 0 : i64, scratch_operands = 0 : i64, tpu.core_type = #tpu.core_type<tc>, window_params = [{transform_indices = @transform_0, window_bounds = array<i64: 32, 128>}, {pipeline_mode = #tpu.pipeline_mode<synchronous>, transform_indices = @transform_1, window_bounds = array<i64: 128, 128>}, {pipeline_mode = #tpu.pipeline_mode<synchronous>, transform_indices = @transform_2, window_bounds = array<i64: 1, 128>}, {pipeline_mode = #tpu.pipeline_mode<synchronous>, transform_indices = @transform_3, window_bounds = array<i64: 128, 128>}, {pipeline_mode = #tpu.pipeline_mode<synchronous>, transform_indices = @transform_4, window_bounds = array<i64: 1, 128>}, {transform_indices = @transform_5, window_bounds = array<i64: 32, 128>}]} {
    %c0 = arith.constant 0 : index
    %c0_0 = arith.constant 0 : index
    %0 = vector.load %arg1[%c0, %c0_0] : memref<32x128xbf16, #tpu.memory_space<vmem>>, vector<32x128xbf16>
    %c0_1 = arith.constant 0 : index
    %c0_2 = arith.constant 0 : index
    %1 = vector.load %arg2[%c0_1, %c0_2] : memref<128x128xbf16, #tpu.memory_space<vmem>>, vector<128x128xbf16>
    %cst = arith.constant dense<0.000000e+00> : vector<32x128xf32>
    %2 = tpu.matmul %0, %1, %cst {dimension_numbers = #tpu.dot_dimension_numbers<[1], [0], [0], [1], [0, 0, 1, 1], [], []>} : vector<32x128xbf16>, vector<128x128xbf16>, vector<32x128xf32> -> vector<32x128xf32>
    %c0_3 = arith.constant 0 : index
    %c0_4 = arith.constant 0 : index
    %3 = vector.load %arg3[%c0_3, %c0_4] : memref<1x128xf32, #tpu.memory_space<vmem>>, vector<1x128xf32>
    %4 = vector.broadcast %3 : vector<1x128xf32> to vector<32x128xf32>
    %5 = arith.addf %2, %4 : vector<32x128xf32>
    %6 = arith.mulf %5, %5 : vector<32x128xf32>
    %7 = arith.mulf %5, %6 : vector<32x128xf32>
    %cst_5 = arith.constant 4.471500e-02 : f32
    %8 = vector.broadcast %cst_5 : f32 to vector<32x128xf32>
    %9 = arith.mulf %8, %7 : vector<32x128xf32>
    %10 = arith.addf %5, %9 : vector<32x128xf32>
    %cst_6 = arith.constant 0.797884583 : f32
    %11 = vector.broadcast %cst_6 : f32 to vector<32x128xf32>
    %12 = arith.mulf %11, %10 : vector<32x128xf32>
    %13 = math.tanh %12 : vector<32x128xf32>
    %cst_7 = arith.constant 1.000000e+00 : f32
    %14 = vector.broadcast %cst_7 : f32 to vector<32x128xf32>
    %15 = arith.addf %14, %13 : vector<32x128xf32>
    %cst_8 = arith.constant 5.000000e-01 : f32
    %16 = vector.broadcast %cst_8 : f32 to vector<32x128xf32>
    %17 = arith.mulf %16, %15 : vector<32x128xf32>
    %18 = arith.mulf %5, %17 : vector<32x128xf32>
    %19 = arith.truncf %18 : vector<32x128xf32> to vector<32x128xbf16>
    %c0_9 = arith.constant 0 : index
    %c0_10 = arith.constant 0 : index
    %20 = vector.load %arg4[%c0_9, %c0_10] : memref<128x128xbf16, #tpu.memory_space<vmem>>, vector<128x128xbf16>
    %cst_11 = arith.constant dense<0.000000e+00> : vector<32x128xf32>
    %21 = tpu.matmul %19, %20, %cst_11 {dimension_numbers = #tpu.dot_dimension_numbers<[1], [0], [0], [1], [0, 0, 1, 1], [], []>} : vector<32x128xbf16>, vector<128x128xbf16>, vector<32x128xf32> -> vector<32x128xf32>
    %c0_12 = arith.constant 0 : index
    %c0_13 = arith.constant 0 : index
    %22 = vector.load %arg5[%c0_12, %c0_13] : memref<1x128xf32, #tpu.memory_space<vmem>>, vector<1x128xf32>
    %23 = vector.broadcast %22 : vector<1x128xf32> to vector<32x128xf32>
    %24 = arith.addf %21, %23 : vector<32x128xf32>
    %c0_14 = arith.constant 0 : index
    %c0_15 = arith.constant 0 : index
    %25 = vector.load %arg6[%c0_14, %c0_15] : memref<32x128xf32, #tpu.memory_space<vmem>>, vector<32x128xf32>
    tpu.vector_store %arg6[%c0_14, %c0_15], %24 {strides = array<i32>} : memref<32x128xf32, #tpu.memory_space<vmem>>, vector<32x128xf32>,
    return
  }
  func.func @transform_0(%arg0: i32) -> (i32, i32) {
    %c0_i32 = arith.constant 0 : i32
    %c0_i32_0 = arith.constant 0 : i32
    return %arg0, %c0_i32 : i32, i32
  }
  func.func @transform_1(%arg0: i32) -> (i32, i32) {
    %c0_i32 = arith.constant 0 : i32
    %c0_i32_0 = arith.constant 0 : i32
    %c0_i32_1 = arith.constant 0 : i32
    return %c0_i32, %c0_i32_0 : i32, i32
  }
  func.func @transform_2(%arg0: i32) -> (i32, i32) {
    %c0_i32 = arith.constant 0 : i32
    %c0_i32_0 = arith.constant 0 : i32
    %c0_i32_1 = arith.constant 0 : i32
    return %c0_i32, %c0_i32_0 : i32, i32
  }
  func.func @transform_3(%arg0: i32) -> (i32, i32) {
    %c0_i32 = arith.constant 0 : i32
    %c0_i32_0 = arith.constant 0 : i32
    %c0_i32_1 = arith.constant 0 : i32
    return %c0_i32, %c0_i32_0 : i32, i32
  }
  func.func @transform_4(%arg0: i32) -> (i32, i32) {
    %c0_i32 = arith.constant 0 : i32
    %c0_i32_0 = arith.constant 0 : i32
    %c0_i32_1 = arith.constant 0 : i32
    return %c0_i32, %c0_i32_0 : i32, i32
  }
  func.func @transform_5(%arg0: i32) -> (i32, i32) {
    %c0_i32 = arith.constant 0 : i32
    %c0_i32_0 = arith.constant 0 : i32
    return %arg0, %c0_i32 : i32, i32
  }
}

module attributes {stable_mosaic.version = 11 : i64} {
  func.func @_mlp_kernel(%arg0: i32, %arg1: memref<32x128xbf16, #tpu.memory_space<vmem>>, %arg2: memref<128x128xbf16, #tpu.memory_space<vmem>>, %arg3: memref<1x128xf32, #tpu.memory_space<vmem>>, %arg4: memref<128x128xbf16, #tpu.memory_space<vmem>>, %arg5: memref<1x128xf32, #tpu.memory_space<vmem>>, %arg6: memref<32x128xf32, #tpu.memory_space<vmem>>) attributes {dimension_semantics = [#tpu.dimension_semantics<parallel>], iteration_bounds = array<i64: 1>, scalar_prefetch = 0 : i64, scratch_operands = 0 : i64, tpu.core_type = #tpu.core_type<tc>, window_params = [{transform_indices = @transform_0, window_bounds = array<i64: 32, 128>}, {pipeline_mode = #tpu.pipeline_mode<synchronous>, transform_indices = @transform_1, window_bounds = array<i64: 128, 128>}, {pipeline_mode = #tpu.pipeline_mode<synchronous>, transform_indices = @transform_2, window_bounds = array<i64: 1, 128>}, {pipeline_mode = #tpu.pipeline_mode<synchronous>, transform_indices = @transform_3, window_bounds = array<i64: 128, 128>}, {pipeline_mode = #tpu.pipeline_mode<synchronous>, transform_indices = @transform_4, window_bounds = array<i64: 1, 128>}, {transform_indices = @transform_5, window_bounds = array<i64: 32, 128>}]} {
    %c0 = arith.constant 0 : index
    %c0_0 = arith.constant 0 : index
    %0 = vector.load %arg1[%c0, %c0_0] : memref<32x128xbf16, #tpu.memory_space<vmem>>, vector<32x128xbf16>
    %c0_1 = arith.constant 0 : index
    %c0_2 = arith.constant 0 : index
    %1 = vector.load %arg2[%c0_1, %c0_2] : memref<128x128xbf16, #tpu.memory_space<vmem>>, vector<128x128xbf16>
    %cst = arith.constant dense<0.000000e+00> : vector<32x128xf32>
    %2 = tpu.matmul %0, %1, %cst {dimension_numbers = #tpu.dot_dimension_numbers<[1], [0], [0], [1], [0, 0, 1, 1], [], []>} : vector<32x128xbf16>, vector<128x128xbf16>, vector<32x128xf32> -> vector<32x128xf32>
    %c0_3 = arith.constant 0 : index
    %c0_4 = arith.constant 0 : index
    %3 = vector.load %arg3[%c0_3, %c0_4] : memref<1x128xf32, #tpu.memory_space<vmem>>, vector<1x128xf32>
    %4 = vector.broadcast %3 : vector<1x128xf32> to vector<32x128xf32>
    %5 = arith.addf %2, %4 : vector<32x128xf32>
    %6 = arith.mulf %5, %5 : vector<32x128xf32>
    %7 = arith.mulf %5, %6 : vector<32x128xf32>
    %cst_5 = arith.constant 4.471500e-02 : f32
    %8 = vector.broadcast %cst_5 : f32 to vector<32x128xf32>
    %9 = arith.mulf %8, %7 : vector<32x128xf32>
    %10 = arith.addf %5, %9 : vector<32x128xf32>
    %cst_6 = arith.constant 0.797884583 : f32
    %11 = vector.broadcast %cst_6 : f32 to vector<32x128xf32>
    %12 = arith.mulf %11, %10 : vector<32x128xf32>
    %13 = math.tanh %12 : vector<32x128xf32>
    %cst_7 = arith.constant 1.000000e+00 : f32
    %14 = vector.broadcast %cst_7 : f32 to vector<32x128xf32>
    %15 = arith.addf %14, %13 : vector<32x128xf32>
    %cst_8 = arith.constant 5.000000e-01 : f32
    %16 = vector.broadcast %cst_8 : f32 to vector<32x128xf32>
    %17 = arith.mulf %16, %15 : vector<32x128xf32>
    %18 = arith.mulf %5, %17 : vector<32x128xf32>
    %19 = arith.truncf %18 : vector<32x128xf32> to vector<32x128xbf16>
    %c0_9 = arith.constant 0 : index
    %c0_10 = arith.constant 0 : index
    %20 = vector.load %arg4[%c0_9, %c0_10] : memref<128x128xbf16, #tpu.memory_space<vmem>>, vector<128x128xbf16>
    %cst_11 = arith.constant dense<0.000000e+00> : vector<32x128xf32>
    %21 = tpu.matmul %19, %20, %cst_11 {dimension_numbers = #tpu.dot_dimension_numbers<[1], [0], [0], [1], [0, 0, 1, 1], [], []>} : vector<32x128xbf16>, vector<128x128xbf16>, vector<32x128xf32> -> vector<32x128xf32>
    %c0_12 = arith.constant 0 : index
    %c0_13 = arith.constant 0 : index
    %22 = vector.load %arg5[%c0_12, %c0_13] : memref<1x128xf32, #tpu.memory_space<vmem>>, vector<1x128xf32>
    %23 = vector.broadcast %22 : vector<1x128xf32> to vector<32x128xf32>
    %24 = arith.addf %21, %23 : vector<32x128xf32>
    %c0_14 = arith.constant 0 : index
    %c0_15 = arith.constant 0 : index
    %25 = vector.load %arg6[%c0_14, %c0_15] : memref<32x128xf32, #tpu.memory_space<vmem>>, vector<32x128xf32>
    tpu.vector_store %arg6[%c0_14, %c0_15], %24 {strides = array<i32>} : memref<32x128xf32, #tpu.memory_space<vmem>>, vector<32x128xf32>,
    return
  }
  func.func @transform_0(%arg0: i32) -> (i32, i32) {
    %c0_i32 = arith.constant 0 : i32
    %c0_i32_0 = arith.constant 0 : i32
    return %arg0, %c0_i32 : i32, i32
  }
  func.func @transform_1(%arg0: i32) -> (i32, i32) {
    %c0_i32 = arith.constant 0 : i32
    %c0_i32_0 = arith.constant 0 : i32
    %c0_i32_1 = arith.constant 0 : i32
    return %c0_i32, %c0_i32_0 : i32, i32
  }
  func.func @transform_2(%arg0: i32) -> (i32, i32) {
    %c0_i32 = arith.constant 0 : i32
    %c0_i32_0 = arith.constant 0 : i32
    %c0_i32_1 = arith.constant 0 : i32
    return %c0_i32, %c0_i32_0 : i32, i32
  }
  func.func @transform_3(%arg0: i32) -> (i32, i32) {
    %c0_i32 = arith.constant 0 : i32
    %c0_i32_0 = arith.constant 0 : i32
    %c0_i32_1 = arith.constant 0 : i32
    return %c0_i32, %c0_i32_0 : i32, i32
  }
  func.func @transform_4(%arg0: i32) -> (i32, i32) {
    %c0_i32 = arith.constant 0 : i32
    %c0_i32_0 = arith.constant 0 : i32
    %c0_i32_1 = arith.constant 0 : i32
    return %c0_i32, %c0_i32_0 : i32, i32
  }
  func.func @transform_5(%arg0: i32) -> (i32, i32) {
    %c0_i32 = arith.constant 0 : i32
    %c0_i32_0 = arith.constant 0 : i32
    return %arg0, %c0_i32 : i32, i32
  }
}

</mosaic_0001>

<bundles_post_ra>
// kernel: _mlp_forward_impl.1
= control target key start
LH: loop header
LB: loop body
LE: loop exit
PB: predicated region body
PF: predicated region fallthrough
CT: control target
= control target key end

     0   :  { %s574_s0 = inlined_call_operand.vmem [shape: bf16[32,128], index: 0, kind: input, shape index: {}]   ;;  %s575_s1 = inlined_call_operand.vmem [shape: bf16[128,128], index: 1, kind: input, shape index: {}]   ;;  %s576_s2 = inlined_call_operand.vmem [shape: f32[1,128], index: 2, kind: input, shape index: {}]   ;;  %s577_s3 = inlined_call_operand.vmem [shape: bf16[128,128], index: 3, kind: input, shape index: {}]   ;;  %s578_s4 = inlined_call_operand.vmem [shape: f32[1,128], index: 4, kind: input, shape index: {}]   ;;  %s579_s5 = inlined_call_operand.hbm [shape: f32[32,128], index: 5, kind: output, shape index: {}]  }
   0x1   :  { %v419_v0 = vld [vmem:[%s575_s1] sm:$0xff]   ;;  %v420_v1 = vld [vmem:[%s575_s1 + $0x8] sm:$0xff]   ;;  %v421_v2 = vld [vmem:[%s575_s1 + $0x10] sm:$0xff]  }
   0x2   :  { %376 = vmatprep.subr.bf16.mxu0 %v419_v0  ;;  %v422_v3 = vld [vmem:[%s575_s1 + $0x18] sm:$0xff]   ;;  %v427_v4 = vld [vmem:[%s574_s0] sm:$0xff]  }
   0x3   :  { %377 = vmatpush3.bf16.msra.mxu0 %v419_v0  ;;  %v423_v5 = vld [vmem:[%s575_s1 + $0x20] sm:$0xff]   ;;  %392 = vmatprep.mubr.bf16.mxu0 %v427_v4 }
   0x4   :  { %378 = vmatprep.subr.bf16.mxu0 %v420_v1 }
   0x7   :  { %379 = vmatpush3.bf16.msra.mxu0 %v420_v1 }
   0x8   :  { %380 = vmatprep.subr.bf16.mxu0 %v421_v2 }
   0xb   :  { %381 = vmatpush3.bf16.msra.mxu0 %v421_v2 }
   0xc   :  { %382 = vmatprep.subr.bf16.mxu0 %v422_v3 }
   0xf   :  { %383 = vmatpush3.bf16.msra.mxu0 %v422_v3 }
  0x10   :  { %10 = vsyncpa [#allocation3], 0  ;;  %384 = vmatprep.subr.bf16.mxu0 %v423_v5  ;;  %v424_v6 = vld [vmem:[%s575_s1 + $0x28] sm:$0xff]   ;;  %v425_v7 = vld [vmem:[%s575_s1 + $0x30] sm:$0xff]   ;;  %s469_s29 = smov [#allocation2]  }
  0x11   :  { %v426_v8 = vld [vmem:[%s575_s1 + $0x38] sm:$0xff]   ;;  %v428_v9 = vld [vmem:[%s574_s0 + $0x8] sm:$0xff]   ;;  %v429_v10 = vld [vmem:[%s577_s3] sm:$0xff]   ;;  %s325_s30 = sshll.u32 %s469_s29, 4  ;;  %s326_s30 = int_to_ptr.vmem [resolvable:$true] %s325_s30 }
  0x12   :  { %396 = vmatprep.subr.bf16.mxu1 %v429_v10  ;;  %v430_v11 = vld [vmem:[%s577_s3 + $0x8] sm:$0xff]   ;;  %v431_v12 = vld [vmem:[%s577_s3 + $0x10] sm:$0xff]   ;;  %v432_v13 = vld [vmem:[%s577_s3 + $0x18] sm:$0xff]   ;;  %s445_s6 = scalar_lea.vmem %s326_s30, 512  ;;  %p450_p1 = scmp.lt.s32.totalorder %s326_s30, %s326_s30 }
  0x13   :  { %385 = vmatpush3.bf16.msra.mxu0 %v423_v5  ;;  %397 = vmatpush3.bf16.msra.mxu1 %v429_v10  ;;  %v433_v14 = vld [vmem:[%s577_s3 + $0x20] sm:$0xff]   ;;  %v434_v15 = vld [vmem:[%s577_s3 + $0x28] sm:$0xff]   ;;  %v435_v16 = vld [vmem:[%s577_s3 + $0x30] sm:$0xff]   ;;  %p446_p0 = scmp.ne.s32.totalorder %s326_s30, %s445_s6  ;;  %p451_p2 = scmp.lt.s32.totalorder %s445_s6, %s445_s6 }
  0x14   :  { %386 = vmatprep.subr.bf16.mxu0 %v424_v6  ;;  %398 = vmatprep.subr.bf16.mxu1 %v430_v11  ;;  %v436_v17 = vld [vmem:[%s577_s3 + $0x38] sm:$0xff]   ;;  %v336_v18 = vld [vmem:[%s576_s2] ss:$0 sm:$0xff] }
  0x15   :  { %v347_v1 = vld [vmem:[%s578_s4] ss:$0 sm:$0xff]  ;;  %p452_p3 = por %p451_p2, %p450_p1 }
  0x17   :  { %387 = vmatpush3.bf16.msra.mxu0 %v424_v6  ;;  %399 = vmatpush3.bf16.msra.mxu1 %v430_v11  ;;  %p453_p4 = pnand %p452_p3, %p446_p0 }
  0x18   :  { %388 = vmatprep.subr.bf16.mxu0 %v425_v7  ;;  %400 = vmatprep.subr.bf16.mxu1 %v431_v12 }
  0x1b   :  { %389 = vmatpush3.bf16.msra.mxu0 %v425_v7  ;;  %401 = vmatpush3.bf16.msra.mxu1 %v431_v12 }
  0x1c   :  { %390 = vmatprep.subr.bf16.mxu0 %v426_v8  ;;  %402 = vmatprep.subr.bf16.mxu1 %v432_v13 }
  0x1f   :  { %391 = vmatpush3.bf16.msra.mxu0 %v426_v8  ;;  %403 = vmatpush3.bf16.msra.mxu1 %v432_v13 }
  0x20   :  { %404 = vmatprep.subr.bf16.mxu1 %v433_v14 }
  0x22   :  { %393 = vmatmul.mubr.bf16.vlgmr.msra.gmra.mrb[0].mxu0 %v428_v9 }
  0x23   :  { %405 = vmatpush3.bf16.msra.mxu1 %v433_v14 }
  0x24   :  { %406 = vmatprep.subr.bf16.mxu1 %v434_v15 }
  0x27   :  { %407 = vmatpush3.bf16.msra.mxu1 %v434_v15 }
  0x28   :  { %408 = vmatprep.subr.bf16.mxu1 %v435_v16 }
  0x2b   :  { %409 = vmatpush3.bf16.msra.mxu1 %v435_v16 }
  0x2c   :  { %410 = vmatprep.subr.bf16.mxu1 %v436_v17 }
  0x2f   :  { %411 = vmatpush3.bf16.msra.mxu1 %v436_v17 }
  0xf5   :  { %v394_v19 = vpop.f32.mrb[0].mxu0 }
  0xf6   :  { %v152_v20 = vadd.f32 %v394_v19, %v336_v18  ;;  %v143_v21 = vpop.f32.mrb[1].mxu0 }
  0xf7   :  { %v144_v22 = vadd.f32 %v336_v18, %v143_v21  ;;  %v395_v23 = vpop.f32.mrb[2].mxu0 }
  0xf8   :  { %v160_v24 = vmul.f32 %v152_v20, %v152_v20  ;;  %v155_v25 = vadd.f32 %v395_v23, %v336_v18  ;;  %v146_v26 = vpop.f32.mrb[3].mxu0 }
  0xf9   :  { %v158_v27 = vmul.f32 %v144_v22, %v144_v22  ;;  %v147_v28 = vadd.f32 %v336_v18, %v146_v26 }
  0xfa   :  { %v164_v29 = vmul.f32 %v160_v24, %v152_v20  ;;  %v161_v30 = vmul.f32 %v155_v25, %v155_v25 }
  0xfb   :  { %v162_v31 = vmul.f32 %v158_v27, %v144_v22  ;;  %v159_v32 = vmul.f32 %v147_v28, %v147_v28 }
  0xfc   :  { %v168_v33 = vmul.f32 0.044715, %v164_v29  ;;  %v165_v34 = vmul.f32 %v161_v30, %v155_v25 }
  0xfd   :  { %v166_v35 = vmul.f32 0.044715, %v162_v31  ;;  %v163_v36 = vmul.f32 %v159_v32, %v147_v28 }
  0xfe   :  { %v172_v37 = vadd.f32 %v168_v33, %v152_v20  ;;  %v169_v38 = vmul.f32 0.044715, %v165_v34 }
  0xff   :  { %v167_v39 = vmul.f32 0.044715, %v163_v36  ;;  %v170_v40 = vadd.f32 %v166_v35, %v144_v22 }
 0x100   :  { %v176_v41 = vmul.f32 0.7978846, %v172_v37  ;;  %v173_v42 = vadd.f32 %v169_v38, %v155_v25 }
 0x101   :  { %v171_v43 = vadd.f32 %v167_v39, %v147_v28  ;;  %v174_v44 = vmul.f32 0.7978846, %v170_v40 }
 0x102   :  { %437 = vtanh.f32 %v176_v41  ;;  %v177_v45 = vmul.f32 0.7978846, %v173_v42 }
 0x103   :  { %v175_v46 = vmul.f32 0.7978846, %v171_v43  ;;  %439 = vtanh.f32 %v174_v44 }
 0x104   :  { %441 = vtanh.f32 %v177_v45 }
 0x105   :  { %443 = vtanh.f32 %v175_v46 }
 0x10c   :  { %v438_v47 = vpop.eup %437 }
 0x10d   :  { %v440_v48 = vpop.eup %439  ;;  %v184_v49 = vadd.f32 1.0, %v438_v47 }
 0x10e   :  { %v442_v50 = vpop.eup %441  ;;  %v182_v51 = vadd.f32 1.0, %v440_v48 }
 0x10f   :  { %v444_v52 = vpop.eup %443  ;;  %v185_v53 = vadd.f32 1.0, %v442_v50  ;;  %v188_v54 = vmul.f32 0.5, %v184_v49 }
 0x110   :  { %v183_v55 = vadd.f32 1.0, %v444_v52  ;;  %v186_v56 = vmul.f32 0.5, %v182_v51 }
 0x111   :  { %v189_v57 = vmul.f32 0.5, %v185_v53  ;;  %v192_v59 = vmul.f32 %v188_v54, %v152_v20 }
 0x112   :  { %v187_v58 = vmul.f32 0.5, %v183_v55  ;;  %v190_v61 = vmul.f32 %v186_v56, %v144_v22 }
 0x113   :  { %v193_v60 = vmul.f32 %v189_v57, %v155_v25 }
 0x114   :  { %v191_v62 = vmul.f32 %v187_v58, %v147_v28 }
 0x115   :  { %v195_v63 = vpack.c.bf16 %v193_v60, %v192_v59 }
 0x116   :  { %v194_v0 = vpack.c.bf16 %v191_v62, %v190_v61 }
 0x118   :  { %412 = vmatprep.mubr.bf16.mxu1 %v194_v0 }
 0x119   :  { %413 = vmatmul.mubr.bf16.vlgmr.msra.gmra.mrb[0].mxu1 %v195_v63 }
 0x1ec   :  { %v414_v2 = vpop.f32.mrb[0].mxu1 }
 0x1ed   :  { %v310_v3 = vadd.f32 %v414_v2, %v347_v1  ;;  %v301_v4 = vpop.f32.mrb[1].mxu1 }
 0x1ee   :  { %v302_v5 = vadd.f32 %v347_v1, %v301_v4  ;;  %v415_v6 = vpop.f32.mrb[2].mxu1 }
 0x1ef   :  { %318 = vst [vmem:[#allocation2 + $0x10] sm:$0xff] %v310_v3  ;;  %v313_v7 = vadd.f32 %v415_v6, %v347_v1  ;;  %v304_v8 = vpop.f32.mrb[3].mxu1 }
 0x1f0   :  { %316 = vst [vmem:[#allocation2] sm:$0xff] %v302_v5  ;;  %v305_v9 = vadd.f32 %v347_v1, %v304_v8 }
 0x1f1   :  { %319 = vst [vmem:[#allocation2 + $0x18] sm:$0xff] %v313_v7 }
 0x1f2   :  { %317 = vst [vmem:[#allocation2 + $0x8] sm:$0xff] %v305_v9 }
 0x1f3   :  { %456 = shalt.err (!%p453_p4)
}
 0x1f4   :  { %s457_s8 = scalar_lea.hbm %s579_s5, 512 }
 0x1f5   :  { %p458_p5 = scmp.ne.s32.totalorder %s579_s5, %s457_s8  ;;  %p461_p6 = scmp.lt.u32.totalorder %s457_s8, %s579_s5 }
 0x1f7   :  { %p463_p7 = pnand %p461_p6, %p458_p5 }
 0x1f9   :  { %466 = shalt.err (!%p463_p7)
}
 0x1fa   :  { %s470_s13 = smov 128   ;;  %s471_s14 = smov 8  }
 0x1fb   :  { %331 = dma.vmem_to_hbm [thread:$0]  %s326_s30, 512, %s579_s5, [#allocation3], %s470_s13, %s470_s13, %s471_s14  }
 0x1fc   :  { %467 = dma.done.wait [#allocation3], 512  }
 0x1fd   :  { %468 = vsyncadd [#allocation3], 4294966784 }
 0x1fe   :  { %335 = vsyncpa [#allocation3], 1 }

// kernel: _mlp_forward_impl.1
= control target key start
LH: loop header
LB: loop body
LE: loop exit
PB: predicated region body
PF: predicated region fallthrough
CT: control target
= control target key end

     0   :  { %s574_s0 = inlined_call_operand.vmem [shape: bf16[32,128], index: 0, kind: input, shape index: {}]   ;;  %s575_s1 = inlined_call_operand.vmem [shape: bf16[128,128], index: 1, kind: input, shape index: {}]   ;;  %s576_s2 = inlined_call_operand.vmem [shape: f32[1,128], index: 2, kind: input, shape index: {}]   ;;  %s577_s3 = inlined_call_operand.vmem [shape: bf16[128,128], index: 3, kind: input, shape index: {}]   ;;  %s578_s4 = inlined_call_operand.vmem [shape: f32[1,128], index: 4, kind: input, shape index: {}]   ;;  %s579_s5 = inlined_call_operand.hbm [shape: f32[32,128], index: 5, kind: output, shape index: {}]  }
   0x1   :  { %v419_v0 = vld [vmem:[%s575_s1] sm:$0xff]   ;;  %v420_v1 = vld [vmem:[%s575_s1 + $0x8] sm:$0xff]   ;;  %v421_v2 = vld [vmem:[%s575_s1 + $0x10] sm:$0xff]  }
   0x2   :  { %376 = vmatprep.subr.bf16.mxu0 %v419_v0  ;;  %v422_v3 = vld [vmem:[%s575_s1 + $0x18] sm:$0xff]   ;;  %v427_v4 = vld [vmem:[%s574_s0] sm:$0xff]  }
   0x3   :  { %377 = vmatpush3.bf16.msra.mxu0 %v419_v0  ;;  %v423_v5 = vld [vmem:[%s575_s1 + $0x20] sm:$0xff]   ;;  %392 = vmatprep.mubr.bf16.mxu0 %v427_v4 }
   0x4   :  { %378 = vmatprep.subr.bf16.mxu0 %v420_v1 }
   0x7   :  { %379 = vmatpush3.bf16.msra.mxu0 %v420_v1 }
   0x8   :  { %380 = vmatprep.subr.bf16.mxu0 %v421_v2 }
   0xb   :  { %381 = vmatpush3.bf16.msra.mxu0 %v421_v2 }
   0xc   :  { %382 = vmatprep.subr.bf16.mxu0 %v422_v3 }
   0xf   :  { %383 = vmatpush3.bf16.msra.mxu0 %v422_v3 }
  0x10   :  { %10 = vsyncpa [#allocation3], 0  ;;  %384 = vmatprep.subr.bf16.mxu0 %v423_v5  ;;  %v424_v6 = vld [vmem:[%s575_s1 + $0x28] sm:$0xff]   ;;  %v425_v7 = vld [vmem:[%s575_s1 + $0x30] sm:$0xff]   ;;  %s469_s29 = smov [#allocation2]  }
  0x11   :  { %v426_v8 = vld [vmem:[%s575_s1 + $0x38] sm:$0xff]   ;;  %v428_v9 = vld [vmem:[%s574_s0 + $0x8] sm:$0xff]   ;;  %v429_v10 = vld [vmem:[%s577_s3] sm:$0xff]   ;;  %s325_s30 = sshll.u32 %s469_s29, 4  ;;  %s326_s30 = int_to_ptr.vmem [resolvable:$true] %s325_s30 }
  0x12   :  { %396 = vmatprep.subr.bf16.mxu1 %v429_v10  ;;  %v430_v11 = vld [vmem:[%s577_s3 + $0x8] sm:$0xff]   ;;  %v431_v12 = vld [vmem:[%s577_s3 + $0x10] sm:$0xff]   ;;  %v432_v13 = vld [vmem:[%s577_s3 + $0x18] sm:$0xff]   ;;  %s445_s6 = scalar_lea.vmem %s326_s30, 512  ;;  %p450_p1 = scmp.lt.s32.totalorder %s326_s30, %s326_s30 }
  0x13   :  { %385 = vmatpush3.bf16.msra.mxu0 %v423_v5  ;;  %397 = vmatpush3.bf16.msra.mxu1 %v429_v10  ;;  %v433_v14 = vld [vmem:[%s577_s3 + $0x20] sm:$0xff]   ;;  %v434_v15 = vld [vmem:[%s577_s3 + $0x28] sm:$0xff]   ;;  %v435_v16 = vld [vmem:[%s577_s3 + $0x30] sm:$0xff]   ;;  %p446_p0 = scmp.ne.s32.totalorder %s326_s30, %s445_s6  ;;  %p451_p2 = scmp.lt.s32.totalorder %s445_s6, %s445_s6 }
  0x14   :  { %386 = vmatprep.subr.bf16.mxu0 %v424_v6  ;;  %398 = vmatprep.subr.bf16.mxu1 %v430_v11  ;;  %v436_v17 = vld [vmem:[%s577_s3 + $0x38] sm:$0xff]   ;;  %v336_v18 = vld [vmem:[%s576_s2] ss:$0 sm:$0xff] }
  0x15   :  { %v347_v1 = vld [vmem:[%s578_s4] ss:$0 sm:$0xff]  ;;  %p452_p3 = por %p451_p2, %p450_p1 }
  0x17   :  { %387 = vmatpush3.bf16.msra.mxu0 %v424_v6  ;;  %399 = vmatpush3.bf16.msra.mxu1 %v430_v11  ;;  %p453_p4 = pnand %p452_p3, %p446_p0 }
  0x18   :  { %388 = vmatprep.subr.bf16.mxu0 %v425_v7  ;;  %400 = vmatprep.subr.bf16.mxu1 %v431_v12 }
  0x1b   :  { %389 = vmatpush3.bf16.msra.mxu0 %v425_v7  ;;  %401 = vmatpush3.bf16.msra.mxu1 %v431_v12 }
  0x1c   :  { %390 = vmatprep.subr.bf16.mxu0 %v426_v8  ;;  %402 = vmatprep.subr.bf16.mxu1 %v432_v13 }
  0x1f   :  { %391 = vmatpush3.bf16.msra.mxu0 %v426_v8  ;;  %403 = vmatpush3.bf16.msra.mxu1 %v432_v13 }
  0x20   :  { %404 = vmatprep.subr.bf16.mxu1 %v433_v14 }
  0x22   :  { %393 = vmatmul.mubr.bf16.vlgmr.msra.gmra.mrb[0].mxu0 %v428_v9 }
  0x23   :  { %405 = vmatpush3.bf16.msra.mxu1 %v433_v14 }
  0x24   :  { %406 = vmatprep.subr.bf16.mxu1 %v434_v15 }
  0x27   :  { %407 = vmatpush3.bf16.msra.mxu1 %v434_v15 }
  0x28   :  { %408 = vmatprep.subr.bf16.mxu1 %v435_v16 }
  0x2b   :  { %409 = vmatpush3.bf16.msra.mxu1 %v435_v16 }
  0x2c   :  { %410 = vmatprep.subr.bf16.mxu1 %v436_v17 }
  0x2f   :  { %411 = vmatpush3.bf16.msra.mxu1 %v436_v17 }
  0xf5   :  { %v394_v19 = vpop.f32.mrb[0].mxu0 }
  0xf6   :  { %v152_v20 = vadd.f32 %v394_v19, %v336_v18  ;;  %v143_v21 = vpop.f32.mrb[1].mxu0 }
  0xf7   :  { %v144_v22 = vadd.f32 %v336_v18, %v143_v21  ;;  %v395_v23 = vpop.f32.mrb[2].mxu0 }
  0xf8   :  { %v160_v24 = vmul.f32 %v152_v20, %v152_v20  ;;  %v155_v25 = vadd.f32 %v395_v23, %v336_v18  ;;  %v146_v26 = vpop.f32.mrb[3].mxu0 }
  0xf9   :  { %v158_v27 = vmul.f32 %v144_v22, %v144_v22  ;;  %v147_v28 = vadd.f32 %v336_v18, %v146_v26 }
  0xfa   :  { %v164_v29 = vmul.f32 %v160_v24, %v152_v20  ;;  %v161_v30 = vmul.f32 %v155_v25, %v155_v25 }
  0xfb   :  { %v162_v31 = vmul.f32 %v158_v27, %v144_v22  ;;  %v159_v32 = vmul.f32 %v147_v28, %v147_v28 }
  0xfc   :  { %v168_v33 = vmul.f32 0.044715, %v164_v29  ;;  %v165_v34 = vmul.f32 %v161_v30, %v155_v25 }
  0xfd   :  { %v166_v35 = vmul.f32 0.044715, %v162_v31  ;;  %v163_v36 = vmul.f32 %v159_v32, %v147_v28 }
  0xfe   :  { %v172_v37 = vadd.f32 %v168_v33, %v152_v20  ;;  %v169_v38 = vmul.f32 0.044715, %v165_v34 }
  0xff   :  { %v167_v39 = vmul.f32 0.044715, %v163_v36  ;;  %v170_v40 = vadd.f32 %v166_v35, %v144_v22 }
 0x100   :  { %v176_v41 = vmul.f32 0.7978846, %v172_v37  ;;  %v173_v42 = vadd.f32 %v169_v38, %v155_v25 }
 0x101   :  { %v171_v43 = vadd.f32 %v167_v39, %v147_v28  ;;  %v174_v44 = vmul.f32 0.7978846, %v170_v40 }
 0x102   :  { %437 = vtanh.f32 %v176_v41  ;;  %v177_v45 = vmul.f32 0.7978846, %v173_v42 }
 0x103   :  { %v175_v46 = vmul.f32 0.7978846, %v171_v43  ;;  %439 = vtanh.f32 %v174_v44 }
 0x104   :  { %441 = vtanh.f32 %v177_v45 }
 0x105   :  { %443 = vtanh.f32 %v175_v46 }
 0x10c   :  { %v438_v47 = vpop.eup %437 }
 0x10d   :  { %v440_v48 = vpop.eup %439  ;;  %v184_v49 = vadd.f32 1.0, %v438_v47 }
 0x10e   :  { %v442_v50 = vpop.eup %441  ;;  %v182_v51 = vadd.f32 1.0, %v440_v48 }
 0x10f   :  { %v444_v52 = vpop.eup %443  ;;  %v185_v53 = vadd.f32 1.0, %v442_v50  ;;  %v188_v54 = vmul.f32 0.5, %v184_v49 }
 0x110   :  { %v183_v55 = vadd.f32 1.0, %v444_v52  ;;  %v186_v56 = vmul.f32 0.5, %v182_v51 }
 0x111   :  { %v189_v57 = vmul.f32 0.5, %v185_v53  ;;  %v192_v59 = vmul.f32 %v188_v54, %v152_v20 }
 0x112   :  { %v187_v58 = vmul.f32 0.5, %v183_v55  ;;  %v190_v61 = vmul.f32 %v186_v56, %v144_v22 }
 0x113   :  { %v193_v60 = vmul.f32 %v189_v57, %v155_v25 }
 0x114   :  { %v191_v62 = vmul.f32 %v187_v58, %v147_v28 }
 0x115   :  { %v195_v63 = vpack.c.bf16 %v193_v60, %v192_v59 }
 0x116   :  { %v194_v0 = vpack.c.bf16 %v191_v62, %v190_v61 }
 0x118   :  { %412 = vmatprep.mubr.bf16.mxu1 %v194_v0 }
 0x119   :  { %413 = vmatmul.mubr.bf16.vlgmr.msra.gmra.mrb[0].mxu1 %v195_v63 }
 0x1ec   :  { %v414_v2 = vpop.f32.mrb[0].mxu1 }
 0x1ed   :  { %v310_v3 = vadd.f32 %v414_v2, %v347_v1  ;;  %v301_v4 = vpop.f32.mrb[1].mxu1 }
 0x1ee   :  { %v302_v5 = vadd.f32 %v347_v1, %v301_v4  ;;  %v415_v6 = vpop.f32.mrb[2].mxu1 }
 0x1ef   :  { %318 = vst [vmem:[#allocation2 + $0x10] sm:$0xff] %v310_v3  ;;  %v313_v7 = vadd.f32 %v415_v6, %v347_v1  ;;  %v304_v8 = vpop.f32.mrb[3].mxu1 }
 0x1f0   :  { %316 = vst [vmem:[#allocation2] sm:$0xff] %v302_v5  ;;  %v305_v9 = vadd.f32 %v347_v1, %v304_v8 }
 0x1f1   :  { %319 = vst [vmem:[#allocation2 + $0x18] sm:$0xff] %v313_v7 }
 0x1f2   :  { %317 = vst [vmem:[#allocation2 + $0x8] sm:$0xff] %v305_v9 }
 0x1f3   :  { %456 = shalt.err (!%p453_p4)
}
 0x1f4   :  { %s457_s8 = scalar_lea.hbm %s579_s5, 512 }
 0x1f5   :  { %p458_p5 = scmp.ne.s32.totalorder %s579_s5, %s457_s8  ;;  %p461_p6 = scmp.lt.u32.totalorder %s457_s8, %s579_s5 }
 0x1f7   :  { %p463_p7 = pnand %p461_p6, %p458_p5 }
 0x1f9   :  { %466 = shalt.err (!%p463_p7)
}
 0x1fa   :  { %s470_s13 = smov 128   ;;  %s471_s14 = smov 8  }
 0x1fb   :  { %331 = dma.vmem_to_hbm [thread:$0]  %s326_s30, 512, %s579_s5, [#allocation3], %s470_s13, %s470_s13, %s471_s14  }
 0x1fc   :  { %467 = dma.done.wait [#allocation3], 512  }
 0x1fd   :  { %468 = vsyncadd [#allocation3], 4294966784 }
 0x1fe   :  { %335 = vsyncpa [#allocation3], 1 }

</bundles_post_ra>
